<compile_context>
chip_gen: v6e
topology: v6e:2x2x1
jax: 0.10.0
libtpu: 0.0.40
codegen_flags: <defaults>
</compile_context>

<pallas_src>
import jax
import jax.numpy as jnp
from jax.experimental import pallas as pl
from jax.experimental.pallas import tpu as pltpu

# ----------------------------- config (small synthetic facemodel) ------------
B = 2                       # batch
NVER = 128                  # number of vertices
N3 = 3 * NVER               # flattened xyz
N_ID, N_EX, N_TEX = 80, 64, 80
N_IDEX = N_ID + N_EX        # 144
N_KP = 17                   # keypoints
COEFF_DIM = N_ID + N_EX + N_TEX + 3 + 27 + 3   # = 257, matches Split_coeff
FOCAL = float(1015 * 4)
IMG_SIZE = 1024.0
HALF_IMG = float(int(IMG_SIZE) // 2)
SIZE_120 = 120.0

SHIFT = 1000.0 * jnp.array([-0.1264155, -7.7968235, 0.8488255], jnp.float32)


# ----------------------------- fused Pallas kernel ---------------------------
def _fused_vertex_kernel(scal_ref,        # SMEM (B, 16): rot(9) | trans(3) | bbox(4)
                         idex_ref,        # VMEM (B, 144) f32
                         tex_ref,         # VMEM (B, 80)  f32
                         shape_basT_ref,  # VMEM (144, 3*NVER) bf16, planar [x..|y..|z..]
                         tex_basT_ref,    # VMEM (80, N3) bf16, interleaved xyz
                         shape_bias_ref,  # VMEM (3, NVER) f32  (meanshape + shift, planar)
                         tex_bias_ref,    # VMEM (1, N3) f32    (meantex)
                         verts_ref,       # out VMEM (B, 3, NVER) f32 (transformed, planar)
                         tex_out_ref):    # out VMEM (B, N3) f32
    # ---- Texture_formation: (B,80) @ (80,N3) + meantex (interleaved layout kept) ----
    tex_out_ref[...] = (
        jnp.dot(tex_ref[...].astype(jnp.bfloat16), tex_basT_ref[...],
                preferred_element_type=jnp.float32)
        + tex_bias_ref[...])

    # ---- Shape_formation: one matmul against stacked planar-reordered [idBase;exBase]^T
    s = jnp.dot(idex_ref[...].astype(jnp.bfloat16), shape_basT_ref[...],
                preferred_element_type=jnp.float32)            # (B, 3*NVER) planar
    xs = s[:, 0:NVER] + shape_bias_ref[0:1, :]                 # (B, NVER), lane-dense
    ys = s[:, NVER:2 * NVER] + shape_bias_ref[1:2, :]
    zs = s[:, 2 * NVER:3 * NVER] + shape_bias_ref[2:3, :]

    # ---- Rigid_transform_block (9 VPU FMAs) + similar_transform(size=120) epilogue ----
    for b in range(B):
        r00 = scal_ref[b, 0]; r01 = scal_ref[b, 1]; r02 = scal_ref[b, 2]
        r10 = scal_ref[b, 3]; r11 = scal_ref[b, 4]; r12 = scal_ref[b, 5]
        r20 = scal_ref[b, 6]; r21 = scal_ref[b, 7]; r22 = scal_ref[b, 8]
        t0 = scal_ref[b, 9]; t1 = scal_ref[b, 10]; t2 = scal_ref[b, 11]
        sx = scal_ref[b, 12]; sy = scal_ref[b, 13]
        ex = scal_ref[b, 14]; ey = scal_ref[b, 15]

        xb = xs[b:b + 1]; yb = ys[b:b + 1]; zb = zs[b:b + 1]   # (1, NVER)
        px = xb * r00 + yb * r10 + zb * r20 + t0
        py = xb * r01 + yb * r11 + zb * r21 + t1
        pz = xb * r02 + yb * r12 + zb * r22 + t2

        scale_x = 0.97 * (ex - sx) / SIZE_120
        scale_y = 0.97 * (ey - sy) / SIZE_120
        s_half = (scale_x + scale_y) * 0.5
        X = (px + 1.0) * scale_x + sx
        Y = (SIZE_120 - py + 1.0) * scale_y + sy
        Z = pz * s_half
        # Full vertex set is resident in this block, so the min is global per batch.
        # TODO(synk): with a tiled 3*NVER grid at real BFM size, compute the z-min in a
        # second tiny reduction pass instead.
        Z = jnp.min(Z) - Z

        verts_ref[b] = jnp.concatenate([X, Y, Z], axis=0)      # (3, NVER) lane-dense store


def fused_vertex_forward(scal, idex_coeff, tex_coeff,
                         shape_basT, texBaseT, shape_bias, meantex):
    verts, tex = pl.pallas_call(
        _fused_vertex_kernel,
        out_shape=(jax.ShapeDtypeStruct((B, 3, NVER), jnp.float32),
                   jax.ShapeDtypeStruct((B, N3), jnp.float32)),
        in_specs=[
            pl.BlockSpec(memory_space=pltpu.MemorySpace.SMEM),   # scalar params
            pl.BlockSpec(memory_space=pltpu.MemorySpace.VMEM),   # idex coeffs
            pl.BlockSpec(memory_space=pltpu.MemorySpace.VMEM),   # tex coeffs
            pl.BlockSpec(memory_space=pltpu.MemorySpace.VMEM),   # shape basis (planar, bf16)
            pl.BlockSpec(memory_space=pltpu.MemorySpace.VMEM),   # tex basis (bf16)
            pl.BlockSpec(memory_space=pltpu.MemorySpace.VMEM),   # shape bias (planar)
            pl.BlockSpec(memory_space=pltpu.MemorySpace.VMEM),   # meantex
        ],
        out_specs=(pl.BlockSpec(memory_space=pltpu.MemorySpace.VMEM),
                   pl.BlockSpec(memory_space=pltpu.MemorySpace.VMEM)),
    )(scal, idex_coeff, tex_coeff, shape_basT, texBaseT, shape_bias, meantex)
    return verts, tex


# ----------------------------- one-time model preparation ---------------------
def prepare_facemodel(idBase, exBase, texBase, meanshape, meantex):
    """Pre-transpose / planar-reorder / bf16-cast the 3DMM bases once at init."""
    def planar_T(base):
        # (N3, C) with rows 3v+c  ->  (C, 3*NVER) with cols c*NVER + v
        c = base.shape[1]
        return jnp.transpose(base.reshape(NVER, 3, c), (2, 1, 0)).reshape(c, 3 * NVER)

    shape_basT = jnp.concatenate(
        [planar_T(idBase), planar_T(exBase)], axis=0).astype(jnp.bfloat16)   # (144, 3*NVER)
    texBaseT = jnp.transpose(texBase).astype(jnp.bfloat16)                   # (80, N3)
    shape_bias = (meanshape.reshape(NVER, 3) + SHIFT[None, :]).T             # (3, NVER) f32
    return (shape_basT, texBaseT,
            shape_bias.astype(jnp.float32), meantex.astype(jnp.float32))


# ----------------------------- JAX glue ---------------------------------------
def compute_rotation_matrix(angles):
    sinx, siny, sinz = jnp.sin(angles[:, 0]), jnp.sin(angles[:, 1]), jnp.sin(angles[:, 2])
    cosx, cosy, cosz = jnp.cos(angles[:, 0]), jnp.cos(angles[:, 1]), jnp.cos(angles[:, 2])
    zeros = jnp.zeros_like(sinx)
    ones = jnp.ones_like(sinx)
    Rx = jnp.stack([ones, zeros, zeros,
                    zeros, cosx, -sinx,
                    zeros, sinx, cosx], axis=-1).reshape(-1, 3, 3)
    Ry = jnp.stack([cosy, zeros, siny,
                    zeros, ones, zeros,
                    -siny, zeros, cosy], axis=-1).reshape(-1, 3, 3)
    Rz = jnp.stack([cosz, -sinz, zeros,
                    sinz, cosz, zeros,
                    zeros, zeros, ones], axis=-1).reshape(-1, 3, 3)
    rot = jnp.matmul(jnp.matmul(Rz, Ry), Rx)
    return jnp.transpose(rot, (0, 2, 1))


@jax.jit
def recon_forward(coeff, bboxs, model, kp_inds):
    shape_basT, texBaseT, shape_bias, meantex = model

    # Split_coeff
    idex_coeff = coeff[:, :N_IDEX]                    # id (80) + ex (64)
    tex_coeff = coeff[:, N_IDEX:N_IDEX + N_TEX]
    angles = coeff[:, 224:227]
    # gamma = coeff[:, 227:254]   # only used with use_lighting=True (not translated)
    translation = coeff[:, 254:257]

    rotation = compute_rotation_matrix(angles)        # (B, 3, 3)
    scal = jnp.concatenate([rotation.reshape(B, 9), translation, bboxs], axis=1)  # (B, 16)

    verts_planar, tex_flat = fused_vertex_forward(
        scal, idex_coeff, tex_coeff, shape_basT, texBaseT, shape_bias, meantex)

    face_texture = tex_flat.reshape(B, NVER, 3)
    face_shape_t = jnp.transpose(verts_planar, (0, 2, 1))          # (B, NVER, 3)

    # get_lms + Projection_block + y-flip, in plain XLA (too tiny for a kernel)
    lms3d = jnp.take(face_shape_t, kp_inds, axis=1)                # (B, K, 3)
    zc = 10.0 - lms3d[..., 2]                                      # reverse_z + camera z
    px = (FOCAL * lms3d[..., 0] + HALF_IMG * zc) / zc
    py = (FOCAL * lms3d[..., 1] + HALF_IMG * zc) / zc
    lms = jnp.stack([px, IMG_SIZE - py], axis=2)

    # TODO(synk): PyTorch3D mesh rasterization (MeshRenderer / TexturesUV / SoftPhongShader)
    # and the derived mask / lighting render have no clean Pallas equivalent.
    rendered_img = None
    mask = None
    return rendered_img, lms, face_texture, coeff, mask, face_shape_t


# ----------------------------- pure-JAX reference ------------------------------
def reference_forward(coeff, bboxs, idBase, exBase, texBase, meanshape, meantex, kp_inds):
    hi = jax.lax.Precision.HIGHEST
    id_coeff = coeff[:, :80]
    ex_coeff = coeff[:, 80:144]
    tex_coeff = coeff[:, 144:224]
    angles = coeff[:, 224:227]
    translation = coeff[:, 254:]

    rotation = compute_rotation_matrix(angles)
    face_shape = (jnp.matmul(id_coeff, idBase.T, precision=hi)
                  + jnp.matmul(ex_coeff, exBase.T, precision=hi) + meanshape)
    face_shape = face_shape.reshape(B, -1, 3) + SHIFT[None, None, :]
    face_texture = (jnp.matmul(tex_coeff, texBase.T, precision=hi)
                    + meantex).reshape(B, -1, 3)

    fs_t = jnp.matmul(face_shape, rotation, precision=hi) + translation[:, None, :]

    x, y, z = fs_t[..., 0], fs_t[..., 1], fs_t[..., 2]
    y = SIZE_120 - y + 1.0
    x = x + 1.0
    sx, sy, ex, ey = bboxs[:, 0], bboxs[:, 1], bboxs[:, 2], bboxs[:, 3]
    scale_x = 0.97 * (ex - sx) / SIZE_120
    scale_y = 0.97 * (ey - sy) / SIZE_120
    x = x * scale_x[:, None] + sx[:, None]
    y = y * scale_y[:, None] + sy[:, None]
    s = (scale_x[:, None] + scale_y[:, None]) / 2.0
    z = z * s
    z = jnp.min(z, axis=1, keepdims=True) - z
    pts = jnp.stack([x, y, z], axis=2)

    lms3d = pts[:, kp_inds, :]
    reverse_z = jnp.diag(jnp.array([1.0, 1.0, -1.0], jnp.float32))
    camera_pos = jnp.array([0.0, 0.0, 10.0], jnp.float32)
    p_matrix = jnp.array([[FOCAL, 0.0, HALF_IMG],
                          [0.0, FOCAL, HALF_IMG],
                          [0.0, 0.0, 1.0]], jnp.float32)
    fs = jnp.matmul(lms3d, reverse_z, precision=hi) + camera_pos
    aug = jnp.matmul(fs, p_matrix.T, precision=hi)
    proj = aug[:, :, :2] / aug[:, :, 2:3]
    lms = jnp.stack([proj[:, :, 0], IMG_SIZE - proj[:, :, 1]], axis=2)
    return lms, face_texture, pts


# ----------------------------- main --------------------------------------------
if __name__ == "__main__":
    key = jax.random.PRNGKey(0)
    k = jax.random.split(key, 8)
    # Deterministic synthetic facemodel parameters (shapes per BFM convention).
    idBase = 0.01 * jax.random.normal(k[0], (N3, N_ID), jnp.float32)
    exBase = 0.01 * jax.random.normal(k[1], (N3, N_EX), jnp.float32)
    texBase = 0.01 * jax.random.normal(k[2], (N3, N_TEX), jnp.float32)
    meanshape = jax.random.normal(k[3], (1, N3), jnp.float32)
    meantex = 0.5 + 0.1 * jax.random.normal(k[4], (1, N3), jnp.float32)
    kp_inds = (jnp.arange(N_KP) * (NVER // N_KP)).astype(jnp.int32)

    # Inputs
    coeff = 0.1 * jax.random.normal(k[5], (B, COEFF_DIM), jnp.float32)
    bboxs = jnp.array([[10.0, 20.0, 110.0, 130.0],
                       [15.0, 5.0, 118.0, 125.0]], jnp.float32)

    # One-time basis pre-transpose / planar reorder / bf16 cast (model init).
    model = prepare_facemodel(idBase, exBase, texBase, meanshape, meantex)

    out = recon_forward(coeff, bboxs, model, kp_inds)
    _, lms, face_texture, coeff_out, _, face_shape_t = out
    jax.block_until_ready((lms, face_texture, face_shape_t))

    ref_lms, ref_tex, ref_pts = reference_forward(
        coeff, bboxs, idBase, exBase, texBase, meanshape, meantex, kp_inds)

    assert jnp.allclose(face_texture, ref_tex, rtol=1e-3, atol=1e-3), "texture mismatch"
    assert jnp.allclose(face_shape_t, ref_pts, rtol=1e-3, atol=1e-2), "shape mismatch"
    assert jnp.allclose(lms, ref_lms, rtol=1e-3, atol=0.5), "lms mismatch"

    print("KERNEL_OK")
</pallas_src>

<mosaic_0001>
module attributes {stable_mosaic.version = 11 : i64} {
  func.func @_fused_vertex_kernel(%arg0: memref<2x16xf32, #tpu.memory_space<smem>>, %arg1: memref<2x144xf32, #tpu.memory_space<vmem>>, %arg2: memref<2x80xf32, #tpu.memory_space<vmem>>, %arg3: memref<144x384xbf16, #tpu.memory_space<vmem>>, %arg4: memref<80x384xbf16, #tpu.memory_space<vmem>>, %arg5: memref<3x128xf32, #tpu.memory_space<vmem>>, %arg6: memref<1x384xf32, #tpu.memory_space<vmem>>, %arg7: memref<2x3x128xf32, #tpu.memory_space<vmem>>, %arg8: memref<2x384xf32, #tpu.memory_space<vmem>>) attributes {dimension_semantics = [], scalar_prefetch = 0 : i64, scratch_operands = 0 : i64, tpu.core_type = #tpu.core_type<tc>} {
    %c0 = arith.constant 0 : index
    %c0_0 = arith.constant 0 : index
    %0 = vector.load %arg2[%c0, %c0_0] : memref<2x80xf32, #tpu.memory_space<vmem>>, vector<2x80xf32>
    %1 = arith.truncf %0 : vector<2x80xf32> to vector<2x80xbf16>
    %c0_1 = arith.constant 0 : index
    %c0_2 = arith.constant 0 : index
    %2 = vector.load %arg4[%c0_1, %c0_2] : memref<80x384xbf16, #tpu.memory_space<vmem>>, vector<80x384xbf16>
    %cst = arith.constant dense<0.000000e+00> : vector<2x384xf32>
    %3 = tpu.matmul %1, %2, %cst {dimension_numbers = #tpu.dot_dimension_numbers<[1], [0], [0], [1], [0, 0, 1, 1], [], []>} : vector<2x80xbf16>, vector<80x384xbf16>, vector<2x384xf32> -> vector<2x384xf32>
    %c0_3 = arith.constant 0 : index
    %c0_4 = arith.constant 0 : index
    %4 = vector.load %arg6[%c0_3, %c0_4] : memref<1x384xf32, #tpu.memory_space<vmem>>, vector<1x384xf32>
    %5 = vector.broadcast %4 : vector<1x384xf32> to vector<2x384xf32>
    %6 = arith.addf %3, %5 : vector<2x384xf32>
    %c0_5 = arith.constant 0 : index
    %c0_6 = arith.constant 0 : index
    %7 = vector.load %arg8[%c0_5, %c0_6] : memref<2x384xf32, #tpu.memory_space<vmem>>, vector<2x384xf32>
    tpu.vector_store %arg8[%c0_5, %c0_6], %6 {strides = array<i32>} : memref<2x384xf32, #tpu.memory_space<vmem>>, vector<2x384xf32>,
    %c0_7 = arith.constant 0 : index
    %c0_8 = arith.constant 0 : index
    %8 = vector.load %arg1[%c0_7, %c0_8] : memref<2x144xf32, #tpu.memory_space<vmem>>, vector<2x144xf32>
    %9 = arith.truncf %8 : vector<2x144xf32> to vector<2x144xbf16>
    %c0_9 = arith.constant 0 : index
    %c0_10 = arith.constant 0 : index
    %10 = vector.load %arg3[%c0_9, %c0_10] : memref<144x384xbf16, #tpu.memory_space<vmem>>, vector<144x384xbf16>
    %cst_11 = arith.constant dense<0.000000e+00> : vector<2x384xf32>
    %11 = tpu.matmul %9, %10, %cst_11 {dimension_numbers = #tpu.dot_dimension_numbers<[1], [0], [0], [1], [0, 0, 1, 1], [], []>} : vector<2x144xbf16>, vector<144x384xbf16>, vector<2x384xf32> -> vector<2x384xf32>
    %12 = vector.extract_strided_slice %11 {offsets = [0, 0], sizes = [2, 128], strides = [1, 1]} : vector<2x384xf32> to vector<2x128xf32>
    %c0_12 = arith.constant 0 : index
    %c0_13 = arith.constant 0 : index
    %13 = vector.load %arg5[%c0_12, %c0_13] : memref<3x128xf32, #tpu.memory_space<vmem>>, vector<1x128xf32>
    %14 = vector.broadcast %13 : vector<1x128xf32> to vector<2x128xf32>
    %15 = arith.addf %12, %14 : vector<2x128xf32>
    %16 = vector.extract_strided_slice %11 {offsets = [0, 128], sizes = [2, 128], strides = [1, 1]} : vector<2x384xf32> to vector<2x128xf32>
    %c1 = arith.constant 1 : index
    %c0_14 = arith.constant 0 : index
    %17 = vector.load %arg5[%c1, %c0_14] : memref<3x128xf32, #tpu.memory_space<vmem>>, vector<1x128xf32>
    %18 = vector.broadcast %17 : vector<1x128xf32> to vector<2x128xf32>
    %19 = arith.addf %16, %18 : vector<2x128xf32>
    %20 = vector.extract_strided_slice %11 {offsets = [0, 256], sizes = [2, 128], strides = [1, 1]} : vector<2x384xf32> to vector<2x128xf32>
    %c2 = arith.constant 2 : index
    %c0_15 = arith.constant 0 : index
    %21 = vector.load %arg5[%c2, %c0_15] : memref<3x128xf32, #tpu.memory_space<vmem>>, vector<1x128xf32>
    %22 = vector.broadcast %21 : vector<1x128xf32> to vector<2x128xf32>
    %23 = arith.addf %20, %22 : vector<2x128xf32>
    %c0_16 = arith.constant 0 : index
    %c0_17 = arith.constant 0 : index
    %24 = memref.load %arg0[%c0_16, %c0_17] : memref<2x16xf32, #tpu.memory_space<smem>>
    %c0_18 = arith.constant 0 : index
    %c1_19 = arith.constant 1 : index
    %25 = memref.load %arg0[%c0_18, %c1_19] : memref<2x16xf32, #tpu.memory_space<smem>>
    %c0_20 = arith.constant 0 : index
    %c2_21 = arith.constant 2 : index
    %26 = memref.load %arg0[%c0_20, %c2_21] : memref<2x16xf32, #tpu.memory_space<smem>>
    %c0_22 = arith.constant 0 : index
    %c3 = arith.constant 3 : index
    %27 = memref.load %arg0[%c0_22, %c3] : memref<2x16xf32, #tpu.memory_space<smem>>
    %c0_23 = arith.constant 0 : index
    %c4 = arith.constant 4 : index
    %28 = memref.load %arg0[%c0_23, %c4] : memref<2x16xf32, #tpu.memory_space<smem>>
    %c0_24 = arith.constant 0 : index
    %c5 = arith.constant 5 : index
    %29 = memref.load %arg0[%c0_24, %c5] : memref<2x16xf32, #tpu.memory_space<smem>>
    %c0_25 = arith.constant 0 : index
    %c6 = arith.constant 6 : index
    %30 = memref.load %arg0[%c0_25, %c6] : memref<2x16xf32, #tpu.memory_space<smem>>
    %c0_26 = arith.constant 0 : index
    %c7 = arith.constant 7 : index
    %31 = memref.load %arg0[%c0_26, %c7] : memref<2x16xf32, #tpu.memory_space<smem>>
    %c0_27 = arith.constant 0 : index
    %c8 = arith.constant 8 : index
    %32 = memref.load %arg0[%c0_27, %c8] : memref<2x16xf32, #tpu.memory_space<smem>>
    %c0_28 = arith.constant 0 : index
    %c9 = arith.constant 9 : index
    %33 = memref.load %arg0[%c0_28, %c9] : memref<2x16xf32, #tpu.memory_space<smem>>
    %c0_29 = arith.constant 0 : index
    %c10 = arith.constant 10 : index
    %34 = memref.load %arg0[%c0_29, %c10] : memref<2x16xf32, #tpu.memory_space<smem>>
    %c0_30 = arith.constant 0 : index
    %c11 = arith.constant 11 : index
    %35 = memref.load %arg0[%c0_30, %c11] : memref<2x16xf32, #tpu.memory_space<smem>>
    %c0_31 = arith.constant 0 : index
    %c12 = arith.constant 12 : index
    %36 = memref.load %arg0[%c0_31, %c12] : memref<2x16xf32, #tpu.memory_space<smem>>
    %c0_32 = arith.constant 0 : index
    %c13 = arith.constant 13 : index
    %37 = memref.load %arg0[%c0_32, %c13] : memref<2x16xf32, #tpu.memory_space<smem>>
    %c0_33 = arith.constant 0 : index
    %c14 = arith.constant 14 : index
    %38 = memref.load %arg0[%c0_33, %c14] : memref<2x16xf32, #tpu.memory_space<smem>>
    %c0_34 = arith.constant 0 : index
    %c15 = arith.constant 15 : index
    %39 = memref.load %arg0[%c0_34, %c15] : memref<2x16xf32, #tpu.memory_space<smem>>
    %40 = vector.extract_strided_slice %15 {offsets = [0, 0], sizes = [1, 128], strides = [1, 1]} : vector<2x128xf32> to vector<1x128xf32>
    %41 = vector.extract_strided_slice %19 {offsets = [0, 0], sizes = [1, 128], strides = [1, 1]} : vector<2x128xf32> to vector<1x128xf32>
    %42 = vector.extract_strided_slice %23 {offsets = [0, 0], sizes = [1, 128], strides = [1, 1]} : vector<2x128xf32> to vector<1x128xf32>
    %43 = vector.broadcast %24 : f32 to vector<1x128xf32>
    %44 = arith.mulf %40, %43 : vector<1x128xf32>
    %45 = vector.broadcast %27 : f32 to vector<1x128xf32>
    %46 = arith.mulf %41, %45 : vector<1x128xf32>
    %47 = arith.addf %44, %46 : vector<1x128xf32>
    %48 = vector.broadcast %30 : f32 to vector<1x128xf32>
    %49 = arith.mulf %42, %48 : vector<1x128xf32>
    %50 = arith.addf %47, %49 : vector<1x128xf32>
    %51 = vector.broadcast %33 : f32 to vector<1x128xf32>
    %52 = arith.addf %50, %51 : vector<1x128xf32>
    %53 = vector.broadcast %25 : f32 to vector<1x128xf32>
    %54 = arith.mulf %40, %53 : vector<1x128xf32>
    %55 = vector.broadcast %28 : f32 to vector<1x128xf32>
    %56 = arith.mulf %41, %55 : vector<1x128xf32>
    %57 = arith.addf %54, %56 : vector<1x128xf32>
    %58 = vector.broadcast %31 : f32 to vector<1x128xf32>
    %59 = arith.mulf %42, %58 : vector<1x128xf32>
    %60 = arith.addf %57, %59 : vector<1x128xf32>
    %61 = vector.broadcast %34 : f32 to vector<1x128xf32>
    %62 = arith.addf %60, %61 : vector<1x128xf32>
    %63 = vector.broadcast %26 : f32 to vector<1x128xf32>
    %64 = arith.mulf %40, %63 : vector<1x128xf32>
    %65 = vector.broadcast %29 : f32 to vector<1x128xf32>
    %66 = arith.mulf %41, %65 : vector<1x128xf32>
    %67 = arith.addf %64, %66 : vector<1x128xf32>
    %68 = vector.broadcast %32 : f32 to vector<1x128xf32>
    %69 = arith.mulf %42, %68 : vector<1x128xf32>
    %70 = arith.addf %67, %69 : vector<1x128xf32>
    %71 = vector.broadcast %35 : f32 to vector<1x128xf32>
    %72 = arith.addf %70, %71 : vector<1x128xf32>
    %73 = arith.subf %38, %36 : f32
    %cst_35 = arith.constant 9.700000e-01 : f32
    %74 = arith.mulf %cst_35, %73 : f32
    %cst_36 = arith.constant 1.200000e+02 : f32
    %75 = arith.divf %74, %cst_36 : f32
    %76 = arith.subf %39, %37 : f32
    %cst_37 = arith.constant 9.700000e-01 : f32
    %77 = arith.mulf %cst_37, %76 : f32
    %cst_38 = arith.constant 1.200000e+02 : f32
    %78 = arith.divf %77, %cst_38 : f32
    %79 = arith.addf %75, %78 : f32
    %cst_39 = arith.constant 5.000000e-01 : f32
    %80 = arith.mulf %79, %cst_39 : f32
    %cst_40 = arith.constant 1.000000e+00 : f32
    %81 = vector.broadcast %cst_40 : f32 to vector<1x128xf32>
    %82 = arith.addf %52, %81 : vector<1x128xf32>
    %83 = vector.broadcast %75 : f32 to vector<1x128xf32>
    %84 = arith.mulf %82, %83 : vector<1x128xf32>
    %85 = vector.broadcast %36 : f32 to vector<1x128xf32>
    %86 = arith.addf %84, %85 : vector<1x128xf32>
    %cst_41 = arith.constant 1.200000e+02 : f32
    %87 = vector.broadcast %cst_41 : f32 to vector<1x128xf32>
    %88 = arith.subf %87, %62 : vector<1x128xf32>
    %cst_42 = arith.constant 1.000000e+00 : f32
    %89 = vector.broadcast %cst_42 : f32 to vector<1x128xf32>
    %90 = arith.addf %88, %89 : vector<1x128xf32>
    %91 = vector.broadcast %78 : f32 to vector<1x128xf32>
    %92 = arith.mulf %90, %91 : vector<1x128xf32>
    %93 = vector.broadcast %37 : f32 to vector<1x128xf32>
    %94 = arith.addf %92, %93 : vector<1x128xf32>
    %95 = vector.broadcast %80 : f32 to vector<1x128xf32>
    %96 = arith.mulf %72, %95 : vector<1x128xf32>
    %97 = vector.shape_cast %96 : vector<1x128xf32> to vector<1x1x128xf32>
    %cst_43 = arith.constant dense<0x7F800000> : vector<1xf32>
    %98 = vector.multi_reduction <minimumf>, %97, %cst_43 [1, 2] : vector<1x1x128xf32> to vector<1xf32>
    %99 = vector.shape_cast %98 : vector<1xf32> to vector<1x1x1xf32>
    %100 = vector.extract %99[0, 0, 0] : f32 from vector<1x1x1xf32>
    %101 = vector.broadcast %100 : f32 to vector<1x128xf32>
    %102 = arith.subf %101, %96 : vector<1x128xf32>
    %103 = tpu.concatenate %86, %94, %102 in 0 : vector<1x128xf32>, vector<1x128xf32>, vector<1x128xf32> -> vector<3x128xf32>
    %c0_44 = arith.constant 0 : index
    %c0_45 = arith.constant 0 : index
    %c0_46 = arith.constant 0 : index
    %104 = vector.load %arg7[%c0_44, %c0_45, %c0_46] : memref<2x3x128xf32, #tpu.memory_space<vmem>>, vector<1x3x128xf32>
    %105 = vector.shape_cast %104 : vector<1x3x128xf32> to vector<3x128xf32>
    %106 = vector.shape_cast %103 : vector<3x128xf32> to vector<1x3x128xf32>
    tpu.vector_store %arg7[%c0_44, %c0_45, %c0_46], %106 {strides = array<i32>} : memref<2x3x128xf32, #tpu.memory_space<vmem>>, vector<1x3x128xf32>,
    %c1_47 = arith.constant 1 : index
    %c0_48 = arith.constant 0 : index
    %107 = memref.load %arg0[%c1_47, %c0_48] : memref<2x16xf32, #tpu.memory_space<smem>>
    %c1_49 = arith.constant 1 : index
    %c1_50 = arith.constant 1 : index
    %108 = memref.load %arg0[%c1_49, %c1_50] : memref<2x16xf32, #tpu.memory_space<smem>>
    %c1_51 = arith.constant 1 : index
    %c2_52 = arith.constant 2 : index
    %109 = memref.load %arg0[%c1_51, %c2_52] : memref<2x16xf32, #tpu.memory_space<smem>>
    %c1_53 = arith.constant 1 : index
    %c3_54 = arith.constant 3 : index
    %110 = memref.load %arg0[%c1_53, %c3_54] : memref<2x16xf32, #tpu.memory_space<smem>>
    %c1_55 = arith.constant 1 : index
    %c4_56 = arith.constant 4 : index
    %111 = memref.load %arg0[%c1_55, %c4_56] : memref<2x16xf32, #tpu.memory_space<smem>>
    %c1_57 = arith.constant 1 : index
    %c5_58 = arith.constant 5 : index
    %112 = memref.load %arg0[%c1_57, %c5_58] : memref<2x16xf32, #tpu.memory_space<smem>>
    %c1_59 = arith.constant 1 : index
    %c6_60 = arith.constant 6 : index
    %113 = memref.load %arg0[%c1_59, %c6_60] : memref<2x16xf32, #tpu.memory_space<smem>>
    %c1_61 = arith.constant 1 : index
    %c7_62 = arith.constant 7 : index
    %114 = memref.load %arg0[%c1_61, %c7_62] : memref<2x16xf32, #tpu.memory_space<smem>>
    %c1_63 = arith.constant 1 : index
    %c8_64 = arith.constant 8 : index
    %115 = memref.load %arg0[%c1_63, %c8_64] : memref<2x16xf32, #tpu.memory_space<smem>>
    %c1_65 = arith.constant 1 : index
    %c9_66 = arith.constant 9 : index
    %116 = memref.load %arg0[%c1_65, %c9_66] : memref<2x16xf32, #tpu.memory_space<smem>>
    %c1_67 = arith.constant 1 : index
    %c10_68 = arith.constant 10 : index
    %117 = memref.load %arg0[%c1_67, %c10_68] : memref<2x16xf32, #tpu.memory_space<smem>>
    %c1_69 = arith.constant 1 : index
    %c11_70 = arith.constant 11 : index
    %118 = memref.load %arg0[%c1_69, %c11_70] : memref<2x16xf32, #tpu.memory_space<smem>>
    %c1_71 = arith.constant 1 : index
    %c12_72 = arith.constant 12 : index
    %119 = memref.load %arg0[%c1_71, %c12_72] : memref<2x16xf32, #tpu.memory_space<smem>>
    %c1_73 = arith.constant 1 : index
    %c13_74 = arith.constant 13 : index
    %120 = memref.load %arg0[%c1_73, %c13_74] : memref<2x16xf32, #tpu.memory_space<smem>>
    %c1_75 = arith.constant 1 : index
    %c14_76 = arith.constant 14 : index
    %121 = memref.load %arg0[%c1_75, %c14_76] : memref<2x16xf32, #tpu.memory_space<smem>>
    %c1_77 = arith.constant 1 : index
    %c15_78 = arith.constant 15 : index
    %122 = memref.load %arg0[%c1_77, %c15_78] : memref<2x16xf32, #tpu.memory_space<smem>>
    %123 = vector.extract_strided_slice %15 {offsets = [1, 0], sizes = [1, 128], strides = [1, 1]} : vector<2x128xf32> to vector<1x128xf32>
    %124 = vector.extract_strided_slice %19 {offsets = [1, 0], sizes = [1, 128], strides = [1, 1]} : vector<2x128xf32> to vector<1x128xf32>
    %125 = vector.extract_strided_slice %23 {offsets = [1, 0], sizes = [1, 128], strides = [1, 1]} : vector<2x128xf32> to vector<1x128xf32>
    %126 = vector.broadcast %107 : f32 to vector<1x128xf32>
    %127 = arith.mulf %123, %126 : vector<1x128xf32>
    %128 = vector.broadcast %110 : f32 to vector<1x128xf32>
    %129 = arith.mulf %124, %128 : vector<1x128xf32>
    %130 = arith.addf %127, %129 : vector<1x128xf32>
    %131 = vector.broadcast %113 : f32 to vector<1x128xf32>
    %132 = arith.mulf %125, %131 : vector<1x128xf32>
    %133 = arith.addf %130, %132 : vector<1x128xf32>
    %134 = vector.broadcast %116 : f32 to vector<1x128xf32>
    %135 = arith.addf %133, %134 : vector<1x128xf32>
    %136 = vector.broadcast %108 : f32 to vector<1x128xf32>
    %137 = arith.mulf %123, %136 : vector<1x128xf32>
    %138 = vector.broadcast %111 : f32 to vector<1x128xf32>
    %139 = arith.mulf %124, %138 : vector<1x128xf32>
    %140 = arith.addf %137, %139 : vector<1x128xf32>
    %141 = vector.broadcast %114 : f32 to vector<1x128xf32>
    %142 = arith.mulf %125, %141 : vector<1x128xf32>
    %143 = arith.addf %140, %142 : vector<1x128xf32>
    %144 = vector.broadcast %117 : f32 to vector<1x128xf32>
    %145 = arith.addf %143, %144 : vector<1x128xf32>
    %146 = vector.broadcast %109 : f32 to vector<1x128xf32>
    %147 = arith.mulf %123, %146 : vector<1x128xf32>
    %148 = vector.broadcast %112 : f32 to vector<1x128xf32>
    %149 = arith.mulf %124, %148 : vector<1x128xf32>
    %150 = arith.addf %147, %149 : vector<1x128xf32>
    %151 = vector.broadcast %115 : f32 to vector<1x128xf32>
    %152 = arith.mulf %125, %151 : vector<1x128xf32>
    %153 = arith.addf %150, %152 : vector<1x128xf32>
    %154 = vector.broadcast %118 : f32 to vector<1x128xf32>
    %155 = arith.addf %153, %154 : vector<1x128xf32>
    %156 = arith.subf %121, %119 : f32
    %cst_79 = arith.constant 9.700000e-01 : f32
    %157 = arith.mulf %cst_79, %156 : f32
    %cst_80 = arith.constant 1.200000e+02 : f32
    %158 = arith.divf %157, %cst_80 : f32
    %159 = arith.subf %122, %120 : f32
    %cst_81 = arith.constant 9.700000e-01 : f32
    %160 = arith.mulf %cst_81, %159 : f32
    %cst_82 = arith.constant 1.200000e+02 : f32
    %161 = arith.divf %160, %cst_82 : f32
    %162 = arith.addf %158, %161 : f32
    %cst_83 = arith.constant 5.000000e-01 : f32
    %163 = arith.mulf %162, %cst_83 : f32
    %cst_84 = arith.constant 1.000000e+00 : f32
    %164 = vector.broadcast %cst_84 : f32 to vector<1x128xf32>
    %165 = arith.addf %135, %164 : vector<1x128xf32>
    %166 = vector.broadcast %158 : f32 to vector<1x128xf32>
    %167 = arith.mulf %165, %166 : vector<1x128xf32>
    %168 = vector.broadcast %119 : f32 to vector<1x128xf32>
    %169 = arith.addf %167, %168 : vector<1x128xf32>
    %cst_85 = arith.constant 1.200000e+02 : f32
    %170 = vector.broadcast %cst_85 : f32 to vector<1x128xf32>
    %171 = arith.subf %170, %145 : vector<1x128xf32>
    %cst_86 = arith.constant 1.000000e+00 : f32
    %172 = vector.broadcast %cst_86 : f32 to vector<1x128xf32>
    %173 = arith.addf %171, %172 : vector<1x128xf32>
    %174 = vector.broadcast %161 : f32 to vector<1x128xf32>
    %175 = arith.mulf %173, %174 : vector<1x128xf32>
    %176 = vector.broadcast %120 : f32 to vector<1x128xf32>
    %177 = arith.addf %175, %176 : vector<1x128xf32>
    %178 = vector.broadcast %163 : f32 to vector<1x128xf32>
    %179 = arith.mulf %155, %178 : vector<1x128xf32>
    %180 = vector.shape_cast %179 : vector<1x128xf32> to vector<1x1x128xf32>
    %cst_87 = arith.constant dense<0x7F800000> : vector<1xf32>
    %181 = vector.multi_reduction <minimumf>, %180, %cst_87 [1, 2] : vector<1x1x128xf32> to vector<1xf32>
    %182 = vector.shape_cast %181 : vector<1xf32> to vector<1x1x1xf32>
    %183 = vector.extract %182[0, 0, 0] : f32 from vector<1x1x1xf32>
    %184 = vector.broadcast %183 : f32 to vector<1x128xf32>
    %185 = arith.subf %184, %179 : vector<1x128xf32>
    %186 = tpu.concatenate %169, %177, %185 in 0 : vector<1x128xf32>, vector<1x128xf32>, vector<1x128xf32> -> vector<3x128xf32>
    %c1_88 = arith.constant 1 : index
    %c0_89 = arith.constant 0 : index
    %c0_90 = arith.constant 0 : index
    %187 = vector.load %arg7[%c1_88, %c0_89, %c0_90] : memref<2x3x128xf32, #tpu.memory_space<vmem>>, vector<1x3x128xf32>
    %188 = vector.shape_cast %187 : vector<1x3x128xf32> to vector<3x128xf32>
    %189 = vector.shape_cast %186 : vector<3x128xf32> to vector<1x3x128xf32>
    tpu.vector_store %arg7[%c1_88, %c0_89, %c0_90], %189 {strides = array<i32>} : memref<2x3x128xf32, #tpu.memory_space<vmem>>, vector<1x3x128xf32>,
    return
  }
}

</mosaic_0001>

<bundles_post_ra>
// kernel: recon_forward.1
= control target key start
LH: loop header
LB: loop body
LE: loop exit
PB: predicated region body
PF: predicated region fallthrough
CT: control target
= control target key end

     0   :  { %s1254_s0 = inlined_call_operand.vmem [shape: f32[2,16], index: 0, kind: input, shape index: {}]   ;;  %s1255_s1 = inlined_call_operand.vmem [shape: f32[2,144], index: 1, kind: input, shape index: {}]   ;;  %s1256_s2 = inlined_call_operand.vmem [shape: f32[2,80], index: 2, kind: input, shape index: {}]   ;;  %s1257_s3 = inlined_call_operand.hbm [shape: bf16[144,384], index: 3, kind: input, shape index: {}]   ;;  %s1258_s4 = inlined_call_operand.vmem [shape: bf16[80,384], index: 4, kind: input, shape index: {}]   ;;  %s1259_s5 = inlined_call_operand.vmem [shape: f32[3,128], index: 5, kind: input, shape index: {}]   ;;  %s1260_s6 = inlined_call_operand.vmem [shape: f32[1,384], index: 6, kind: input, shape index: {}]   ;;  %s1261_s7 = inlined_call_operand.vmem [shape: f32[2,3,128], index: 7, kind: output, shape index: {0}]   ;;  %s1262_s8 = inlined_call_operand.vmem [shape: f32[2,384], index: 8, kind: output, shape index: {1}]  }
   0x1   :  { %1269 = sst [smem:[#allocation17_spill]] %s1261_s7 }
   0x2   :  { %14 = vsyncpa [#allocation4], 0  ;;  %s22_s29 = sshll.u32 %s1254_s0, 4  ;;  %s23_s29 = int_to_ptr.vmem [resolvable:$true] %s22_s29 }
   0x3   :  { %15 = vsyncpa [#allocation3], 0  ;;  %s946_s30 = scalar_lea.vmem %s23_s29, 32  ;;  %p951_p1 = scmp.lt.s32.totalorder %s23_s29, %s23_s29 }
   0x4   :  { %p947_p0 = scmp.ne.s32.totalorder %s23_s29, %s946_s30  ;;  %p952_p2 = scmp.lt.s32.totalorder %s946_s30, %s946_s30 }
   0x6   :  { %p953_p3 = por %p952_p2, %p951_p1 }
   0x8   :  { %p954_p4 = pnand %p953_p3, %p947_p0 }
   0xa   :  { %957 = shalt.err (!%p954_p4)
}
   0xb   :  { %s982_s9 = smov [#allocation2]   ;;  %s983_s10 = smov [#allocation5]  }
   0xc   :  { %25 = dma.vmem_to_smem %s23_s29, 32, %s982_s9, [#allocation4]  }
   0xd   :  { %s35_s11 = sshll.u32 %s983_s10, 4  ;;  %s36_s11 = int_to_ptr.vmem [resolvable:$true] %s35_s11 }
   0xe   :  { %s966_s12 = scalar_lea.vmem %s36_s11, 3456  ;;  %p971_p6 = scmp.lt.s32.totalorder %s36_s11, %s36_s11 }
   0xf   :  { %p967_p5 = scmp.ne.s32.totalorder %s36_s11, %s966_s12  ;;  %p972_p7 = scmp.lt.s32.totalorder %s966_s12, %s966_s12 }
  0x11   :  { %p973_p8 = por %p972_p7, %p971_p6 }
  0x13   :  { %p974_p9 = pnand %p973_p8, %p967_p5 }
  0x15   :  { %977 = shalt.err (!%p974_p9)
}
  0x16   :  { %s984_s0 = smov 192   ;;  %s985_s13 = smov 12  }
  0x17   :  { %41 = dma.hbm_to_vmem [thread:$0]  %s1257_s3, 3456, %s36_s11, [#allocation3], %s984_s0, %s984_s0, %s985_s13  }
  0x18   :  { %978 = dma.done.wait [#allocation4], 32  }
  0x19   :  { %979 = vsyncadd [#allocation4], 4294967264 }
  0x1a   :  { %980 = dma.done.wait [#allocation3], 3456  }
  0x1b   :  { %981 = vsyncadd [#allocation3], 4294963840 }
  0x1c   :  { %54 = sfence }
  0x1d   :  { %v890_v0 = vld [vmem:[%s1258_s4 + $0x64] ss:$12 sps:$4 sm:$0xff]   ;;  %v986_v1 = vmov 0.0   ;;  %v892_v2 = vld [vmem:[%s1258_s4 + $0x68] ss:$12 sps:$4 sm:$0xff]   ;;  %vm987_vm0 = vmmov 0   ;;  %v80_v50 = vlaneseq }
  0x1e   :  { %864 = vmatprep.subr.bf16.mxu1 %v986_v1  ;;  %874 = vmatprep.mubr.msk.bf16.mxu1 %vm987_vm0, %v986_v1  ;;  %v893_v3 = vld [vmem:[%s1258_s4 + $0x60] ss:$12 sps:$4 sm:$0xff]   ;;  %v988_v5 = vmov 0   ;;  %v896_v6 = vld [vmem:[%s1258_s4 + $0x50] ss:$12 sps:$4 sm:$0xff]   ;;  %vm175_vm1 = vcmask 654336  }
  0x1f   :  { %185 = vmatprep.subr.bf16.mxu0 %v890_v0  ;;  %865 = vmatpush3.bf16.msra.mxu1 %v892_v2  ;;  %v894_v4 = vld [vmem:[%s1258_s4 + $0x4c] ss:$12 sps:$4 sm:$0xff]   ;;  %v897_v7 = vld [vmem:[%s1258_s4 + $0x48] ss:$12 sps:$4 sm:$0xff]   ;;  %v901_v10 = vld [vmem:[%s1258_s4 + $0x30] ss:$12 sps:$4 sm:$0xff]  }
  0x20   :  { %211 = vmatprep.mubr.bf16.mxu0 %v988_v5  ;;  %186 = vmatpush1.bf16.msra.mxu0 %v893_v3  ;;  %v898_v8 = vld [vmem:[%s1258_s4 + $0x34] ss:$12 sps:$4 sm:$0xff]   ;;  %v900_v9 = vld [vmem:[%s1258_s4 + $0x38] ss:$12 sps:$4 sm:$0xff]   ;;  %v902_v11 = vld [vmem:[%s1258_s4 + $0x1c] ss:$12 sps:$4 sm:$0xff]  }
  0x21   :  { %866 = vmatprep.subr.bf16.mxu1 %v986_v1  ;;  %187 = vmatprep.subr.bf16.mxu0 %v894_v4  ;;  %v904_v12 = vld [vmem:[%s1258_s4 + $0x20] ss:$12 sps:$4 sm:$0xff]   ;;  %v905_v13 = vld [vmem:[%s1258_s4 + $0x18] ss:$12 sps:$4 sm:$0xff]   ;;  %v908_v15 = vld [vmem:[%s1258_s4 + $0x8] ss:$12 sps:$4 sm:$0xff]  }
  0x22   :  { %v906_v14 = vld [vmem:[%s1258_s4 + $0x4] ss:$12 sps:$4 sm:$0xff]   ;;  %v56_v16 = vld [vmem:[%s1256_s2] sm:$0x3]  ;;  %v912_v18 = vld [vmem:[#allocation5 + $0xac] ss:$12 sps:$4 sm:$0xff]  }
  0x23   :  { %867 = vmatpush3.bf16.msra.mxu1 %v896_v6  ;;  %v909_v17 = vld [vmem:[%s1258_s4] ss:$12 sps:$4 sm:$0xff]   ;;  %v57_v19 = vpack.c.bf16 %v56_v16, %v56_v16  ;;  %v913_v20 = vld [vmem:[#allocation5 + $0xb0] ss:$12 sps:$4 sm:$0xff]   ;;  %v910_v21 = vld [vmem:[#allocation5 + $0xa8] ss:$12 sps:$4 sm:$0xff]  }
  0x24   :  { %188 = vmatpush1.bf16.msra.mxu0 %v897_v7  ;;  %868 = vmatprep.subr.bf16.mxu1 %v986_v1  ;;  %v916_v22 = vld [vmem:[#allocation5 + $0x94] ss:$12 sps:$4 sm:$0xff]   ;;  %v917_v23 = vld [vmem:[#allocation5 + $0x98] ss:$12 sps:$4 sm:$0xff]   ;;  %v914_v24 = vld [vmem:[#allocation5 + $0x90] ss:$12 sps:$4 sm:$0xff]  }
  0x25   :  { %189 = vmatprep.subr.bf16.mxu0 %v898_v8  ;;  %v920_v25 = vld [vmem:[#allocation5 + $0x7c] ss:$12 sps:$4 sm:$0xff]   ;;  %v921_v26 = vld [vmem:[#allocation5 + $0x80] ss:$12 sps:$4 sm:$0xff]   ;;  %v918_v27 = vld [vmem:[#allocation5 + $0x78] ss:$12 sps:$4 sm:$0xff]  }
  0x26   :  { %v924_v28 = vld [vmem:[#allocation5 + $0x64] ss:$12 sps:$4 sm:$0xff]   ;;  %v925_v29 = vld [vmem:[#allocation5 + $0x68] ss:$12 sps:$4 sm:$0xff]   ;;  %v922_v30 = vld [vmem:[#allocation5 + $0x60] ss:$12 sps:$4 sm:$0xff]  }
  0x27   :  { %869 = vmatpush3.bf16.msra.mxu1 %v900_v9  ;;  %v928_v31 = vld [vmem:[#allocation5 + $0x4c] ss:$12 sps:$4 sm:$0xff]   ;;  %v793_v32 = vld.sshfl [vmem:[%s1255_s1] sm:$0x33 pattern:$0x76325410] }
  0x28   :  { %190 = vmatpush1.bf16.msra.mxu0 %v901_v10  ;;  %870 = vmatprep.subr.bf16.mxu1 %v986_v1  ;;  %v290_v33 = vcombine.high %v793_v32, %v793_v32  ;;  %v929_v34 = vld [vmem:[#allocation5 + $0x50] ss:$12 sps:$4 sm:$0xff]   ;;  %vm475_vm2 = vcmask 130048   ;;  %v926_v35 = vld [vmem:[#allocation5 + $0x48] ss:$12 sps:$4 sm:$0xff]   ;;  %v293_v49 = vpack.c.bf16 %v793_v32, %v793_v32  ;;  %v81_v51 = vshrl.u32 %v80_v50, 7 }
  0x29   :  { %191 = vmatprep.subr.bf16.mxu0 %v902_v11  ;;  %v932_v37 = vld [vmem:[#allocation5 + $0x34] ss:$12 sps:$4 sm:$0xff]   ;;  %v933_v38 = vld [vmem:[#allocation5 + $0x38] ss:$12 sps:$4 sm:$0xff]   ;;  %v930_v39 = vld [vmem:[#allocation5 + $0x30] ss:$12 sps:$4 sm:$0xff]  }
  0x2a   :  { %v294_v36 = vpack.c.bf16 %v290_v33, %v290_v33  ;;  %v936_v40 = vld [vmem:[#allocation5 + $0x1c] ss:$12 sps:$4 sm:$0xff]   ;;  %v937_v41 = vld [vmem:[#allocation5 + $0x20] ss:$12 sps:$4 sm:$0xff]   ;;  %v934_v42 = vld [vmem:[#allocation5 + $0x18] ss:$12 sps:$4 sm:$0xff]  }
  0x2b   :  { %871 = vmatpush3.bf16.msra.mxu1 %v904_v12  ;;  %v940_v43 = vld [vmem:[#allocation5 + $0x4] ss:$12 sps:$4 sm:$0xff]   ;;  %v941_v44 = vld [vmem:[#allocation5 + $0x8] ss:$12 sps:$4 sm:$0xff]   ;;  %v938_v45 = vld [vmem:[#allocation5] ss:$12 sps:$4 sm:$0xff]  }
  0x2c   :  { %192 = vmatpush1.bf16.msra.mxu0 %v905_v13  ;;  %872 = vmatprep.subr.bf16.mxu1 %v986_v1  ;;  %v944_v46 = vld [vmem:[#allocation5 + $0xc4] ss:$12 sps:$4 sm:$0xff]   ;;  %v945_v47 = vld [vmem:[#allocation5 + $0xc8] ss:$12 sps:$4 sm:$0xff]   ;;  %v942_v48 = vld [vmem:[#allocation5 + $0xc0] ss:$12 sps:$4 sm:$0xff]  }
  0x2d   :  { %193 = vmatprep.subr.bf16.mxu0 %v906_v14  ;;  %v90_v52 = vsub.s32 2, %v81_v51  ;;  %v989_v53 = vmov 1983009808   ;;  %v82_v55 = vsub.s32 0, %v81_v51  ;;  %v78_v56 = vld [vmem:[%s1260_s6] sm:$0x7] }
  0x2e   :  { %v265_v54 = vunpack.c.l.s4 %v989_v53  ;;  %v86_v57 = vsub.s32 1, %v81_v51  ;;  %s1105_s24 = sld [smem:[#allocation2 + $0x80]]  ;;  %v825_v14 = vld [vmem:[%s1259_s5 + $0x2] ss:$0 sm:$0xff]  ;;  %v823_v16 = vld [vmem:[%s1259_s5] ss:$0 sm:$0xff] }
  0x2f   :  { %873 = vmatpush3.bf16.msra.mxu1 %v908_v15  ;;  %v91_v58 = vrot.slane %v78_v56, %v90_v52  ;;  %v83_v60 = vrot.slane %v78_v56, %v82_v55  ;;  %s1107_s25 = sld [smem:[#allocation2 + $0x81]]  ;;  %vm649_vm3 = vcmask 1040384   ;;  %vm743_vm4 = vcmask 1041409  }
  0x30   :  { %194 = vmatpush1.bf16.msra.mxu0 %v909_v17  ;;  %520 = vmatprep.subr.bf16.mxu1 %v988_v5  ;;  %v266_v59 = vunpack.c.0.s8 %v265_v54  ;;  %s1109_s26 = sld [smem:[#allocation2 + $0x83]]  ;;  %v87_v62 = vrot.slane %v78_v56, %v86_v57  ;;  %vm669_vm5 = vcmask 1041408  }
  0x31   :  { %479 = vmatprep.subr.bf16.mxu0 %v912_v18  ;;  %s1111_s27 = sld [smem:[#allocation2 + $0x84]] }
  0x32   :  { %875 = vmatmul.mubr.msk.bf16.vlgmr.msra.gmra.mxu1 %vm175_vm1, %v57_v19  ;;  %s1113_s28 = sld [smem:[#allocation2]]  ;;  %v269_v1 = vsub.s32 %v266_v59, %v81_v51 }
  0x33   :  { %791 = vmatmul.mubr.msk.bf16.vlgmr.msra.gmra.mxu0 %vm175_vm1, %v57_v19  ;;  %521 = vmatpush1.bf16.msra.mxu1 %v913_v20  ;;  %s1115_s6 = sld [smem:[#allocation2 + $0x1]] }
  0x34   :  { %480 = vmatpush1.bf16.msra.mxu0 %v910_v21  ;;  %522 = vmatprep.subr.bf16.mxu1 %v988_v5  ;;  %s1117_s29 = sld [smem:[#allocation2 + $0x2]]  ;;  %v688_v15 = vstv %s1105_s24 }
  0x35   :  { %481 = vmatprep.subr.bf16.mxu0 %v916_v22  ;;  %822 = vmatprep.mubr.msk.bf16.mxu1 %vm475_vm2, %v294_v36  ;;  %s1119_s30 = sld [smem:[#allocation2 + $0x3]]  ;;  %v698_v17 = vstv %s1107_s25 }
  0x36   :  { %821 = vmatprep.mubr.msk.bf16.mxu0 %vm475_vm2, %v294_v36  ;;  %s1121_s9 = sld [smem:[#allocation2 + $0x4]]  ;;  %v690_v18 = vstv %s1109_s26  ;;  %v824_v36 = vld [vmem:[%s1259_s5 + $0x1] ss:$0 sm:$0xff] }
  0x37   :  { %523 = vmatpush1.bf16.msra.mxu1 %v917_v23  ;;  %s1123_s10 = sld [smem:[#allocation2 + $0x5]]  ;;  %v700_v19 = vstv %s1111_s27 }
  0x38   :  { %482 = vmatpush1.bf16.msra.mxu0 %v914_v24  ;;  %524 = vmatprep.subr.bf16.mxu1 %v988_v5  ;;  %s1125_s11 = sld [smem:[#allocation2 + $0x6]]  ;;  %v594_v20 = vstv %s1113_s28 }
  0x39   :  { %483 = vmatprep.subr.bf16.mxu0 %v920_v25  ;;  %s1127_s12 = sld [smem:[#allocation2 + $0x7]]  ;;  %v604_v22 = vstv %s1115_s6 }
  0x3a   :  { %s1129_s0 = sld [smem:[#allocation2 + $0x8]]  ;;  %v614_v24 = vstv %s1117_s29 }
  0x3b   :  { %525 = vmatpush1.bf16.msra.mxu1 %v921_v26  ;;  %s1131_s13 = sld [smem:[#allocation2 + $0x9]]  ;;  %v596_v21 = vstv %s1119_s30 }
  0x3c   :  { %484 = vmatpush1.bf16.msra.mxu0 %v918_v27  ;;  %526 = vmatprep.subr.bf16.mxu1 %v988_v5  ;;  %s1133_s14 = sld [smem:[#allocation2 + $0xa]]  ;;  %v606_v23 = vstv %s1121_s9 }
  0x3d   :  { %485 = vmatprep.subr.bf16.mxu0 %v924_v28  ;;  %s1138_s17 = sld [smem:[#allocation2 + $0xc]]  ;;  %v616_v27 = vstv %s1123_s10 }
  0x3e   :  { %s1140_s18 = sld [smem:[#allocation2 + $0xd]]  ;;  %v599_v25 = vstv %s1125_s11 }
  0x3f   :  { %527 = vmatpush1.bf16.msra.mxu1 %v925_v29  ;;  %s839_s19 = sld [smem:[#allocation2 + $0xe]]  ;;  %v609_v26 = vstv %s1127_s12 }
  0x40   :  { %486 = vmatpush1.bf16.msra.mxu0 %v922_v30  ;;  %528 = vmatprep.subr.bf16.mxu1 %v988_v5  ;;  %1270 = sst [smem:[#allocation8_spill]] %s1129_s0 }
  0x41   :  { %487 = vmatprep.subr.bf16.mxu0 %v928_v31  ;;  %1271 = sst [smem:[#allocation9_spill]] %s1131_s13 }
  0x42   :  { %1272 = sst [smem:[#allocation10_spill]] %s1133_s14 }
  0x43   :  { %529 = vmatpush1.bf16.msra.mxu1 %v929_v34  ;;  %s840_s20 = sld [smem:[#allocation2 + $0xf]]  ;;  %v639_v33 = vstv %s1138_s17 }
  0x44   :  { %488 = vmatpush1.bf16.msra.mxu0 %v926_v35  ;;  %530 = vmatprep.subr.bf16.mxu1 %v988_v5  ;;  %1273 = sst [smem:[#allocation11_spill]] %s1140_s18 }
  0x45   :  { %489 = vmatprep.subr.bf16.mxu0 %v932_v37  ;;  %s1142_s3 = sld [smem:[#allocation2 + $0x8c]] }
  0x46   :  { %s1144_s21 = sld [smem:[#allocation2 + $0x8d]] }
  0x47   :  { %531 = vmatpush1.bf16.msra.mxu1 %v933_v38  ;;  %s855_s22 = sld [smem:[#allocation2 + $0x8e]] }
  0x48   :  { %490 = vmatpush1.bf16.msra.mxu0 %v930_v39  ;;  %532 = vmatprep.subr.bf16.mxu1 %v988_v5  ;;  %s856_s2 = sld [smem:[#allocation2 + $0x8f]] }
  0x49   :  { %491 = vmatprep.subr.bf16.mxu0 %v936_v40  ;;  %s1146_s4 = sld [smem:[#allocation2 + $0xb]] }
  0x4a   :  { %s1148_s1 = sld [smem:[#allocation2 + $0x86]] }
  0x4b   :  { %533 = vmatpush1.bf16.msra.mxu1 %v937_v41  ;;  %1274 = sst [smem:[#allocation12_spill]] %s1142_s3 }
  0x4c   :  { %492 = vmatpush1.bf16.msra.mxu0 %v934_v42  ;;  %534 = vmatprep.subr.bf16.mxu1 %v988_v5  ;;  %1275 = sst [smem:[#allocation13_spill]] %s1144_s21 }
  0x4d   :  { %493 = vmatprep.subr.bf16.mxu0 %v940_v43  ;;  %s1152_s23 = sld [smem:[#allocation2 + $0x89]] }
  0x4e   :  { %s624_s15 = ssub.f32 %s839_s19, %s1138_s17 }
  0x4f   :  { %535 = vmatpush1.bf16.msra.mxu1 %v941_v44  ;;  %s629_s16 = ssub.f32 %s840_s20, %s1140_s18  ;;  %v622_v32 = vstv %s1146_s4 }
  0x50   :  { %494 = vmatpush1.bf16.msra.mxu0 %v938_v45  ;;  %550 = vmatprep.subr.bf16.mxu1 %v988_v5  ;;  %1276 = sst [smem:[#allocation14_spill]] %s1148_s1  ;;  %s1158_s13 = smul.f32 0.97, %s624_s15 }
  0x51   :  { %509 = vmatprep.subr.bf16.mxu0 %v944_v46  ;;  %s718_s7 = ssub.f32 %s855_s22, %s1142_s3  ;;  %s1162_s1 = smul.f32 0.97, %s629_s16 }
  0x52   :  { %s723_s14 = ssub.f32 %s856_s2, %s1144_s21  ;;  %s1285_s29 = smul.f32 0.008333334, %s1158_s13 }
  0x53   :  { %551 = vmatpush2.bf16.msra.mxu1 %v945_v47  ;;  %s1160_s0 = sld [smem:[#allocation2 + $0x8a]]  ;;  %s1166_s19 = smul.f32 0.97, %s718_s7  ;;  %v696_v38 = vstv %s1152_s23 }
  0x54   :  { %510 = vmatpush2.bf16.msra.mxu0 %v942_v48  ;;  %s1168_s20 = sld [smem:[#allocation2 + $0x85]]  ;;  %s1170_s22 = smul.f32 0.97, %s723_s14 }
  0x55   :  { %s1172_s2 = sld [smem:[#allocation2 + $0x88]]  ;;  %s633_s18 = smul.f32 0.008333334, %s1162_s1 }
  0x56   :  { %553 = vmatmul.mubr.bf16.vlgmr.msra.gmra.mxu1 %v293_v49  ;;  %s1279_s16 = sld [smem:[#allocation8_spill]]  ;;  %s722_s15 = smul.f32 0.008333334, %s1166_s19 }
  0x57   :  { %512 = vmatmul.mubr.bf16.vlgmr.msra.gmra.mxu0 %v293_v49  ;;  %s1280_s14 = sld [smem:[#allocation9_spill]]  ;;  %s727_s25 = smul.f32 0.008333334, %s1170_s22 }
  0x58   :  { %s1282_s24 = sld [smem:[#allocation14_spill]]  ;;  %s1286_s11 = smov %s1285_s29 }
  0x59   :  { %s1207_s6 = sld [smem:[#allocation2 + $0x8b]]  ;;  %v706_v42 = vstv %s1160_s0 }
  0x5a   :  { %1278 = sst [smem:[#allocation16_spill]] %s1168_s20 }
  0x5b   :  { %s1281_s20 = sld [smem:[#allocation10_spill]]  ;;  %v713_v49 = vstv %s1172_s2 }
  0x5c   :  { %v619_v28 = vstv %s1279_s16  ;;  %s1284_s26 = sld [smem:[#allocation16_spill]] }
  0x5d   :  { %v602_v30 = vstv %s1280_s14  ;;  %s1213_s30 = sadd.f32 %s633_s18, %s1285_s29 }
  0x5e   :  { %v693_v37 = vstv %s1282_s24  ;;  %s1223_s5 = sadd.f32 %s727_s25, %s722_s15 }
  0x5f   :  { %s635_s9 = smul.f32 0.5, %s1213_s30  ;;  %s1287_s12 = sld [smem:[#allocation12_spill]] }
  0x60   :  { %s729_s10 = smul.f32 0.5, %s1223_s5  ;;  %s1288_s0 = sld [smem:[#allocation13_spill]] }
  0x61   :  { %v612_v31 = vstv %s1281_s20  ;;  %s1289_s13 = sld [smem:[#allocation11_spill]] }
  0x62   :  { %v710_v44 = vstv %s1284_s26  ;;  %s1290_s1 = sld [smem:[#allocation17_spill]] }
  0xf2   :  { %v254_v61 = vpop.f32.mrf.mxu1 }
  0xf3   :  { %v213_v63 = vpop.f32.mrf.mxu0  ;;  %v255_v0 = vadd.f32 %v254_v61, %v91_v58 }
  0xf4   :  { %v214_v2 = vadd.f32 %v213_v63, %v83_v60  ;;  %v876_v3 = vpop.f32.mrf.mxu1 }
  0xf5   :  { %v215_v4 = vpop.f32.mrf.mxu0  ;;  %v277_v8 = vrot.slane %v255_v0, %v269_v1 }
  0xf6   :  { %v216_v5 = vadd.f32 %v215_v4, %v87_v62  ;;  %v257_v6 = vpop.f32.mrf.mxu1 }
  0xf7   :  { %v217_v7 = vpop.f32.mrf.mxu0 }
  0xf8   :  { %v263_v9 = vcombine.low %v214_v2, %v216_v5  ;;  %v877_v10 = vpop.f32.mrf.mxu1 }
  0xf9   :  { %v218_v11 = vpop.f32.mrf.mxu0  ;;  %v637_v10 = vstv %s1286_s11 }
  0xfa   :  { %v270_v12 = vrot.slane %v263_v9, %v269_v1 }
  0xfc   :  { %v278_v13 = vcombine.low %v270_v12, %v277_v8 }
  0xfe   :  { %280 = vst [vmem:[%s1262_s8] sm:$0x3f] %v278_v13  ;;  %s1150_s8 = sld [smem:[#allocation2 + $0x87]]  ;;  %v716_v13 = vstv %s1207_s6 }
 0x104   :  { %1277 = sst [smem:[#allocation15_spill]] %s1150_s8 }
 0x105   :  { %s1164_s8 = sld [smem:[#allocation2 + $0x82]] }
 0x106   :  { %s1283_s21 = sld [smem:[#allocation15_spill]] }
 0x10b   :  { %v708_v43 = vstv %s1164_s8 }
 0x10c   :  { %v703_v39 = vstv %s1283_s21 }
 0x116   :  { %v554_v29 = vpop.f32.mrf.mxu1 }
 0x117   :  { %v577_v34 = vadd.f32 %v825_v14, %v554_v29  ;;  %v513_v35 = vpop.f32.mrf.mxu0 }
 0x118   :  { %v565_v40 = vadd.f32 %v823_v16, %v513_v35  ;;  %v556_v41 = vpop.f32.mrf.mxu1 }
 0x119   :  { %v515_v45 = vpop.f32.mrf.mxu0  ;;  %v600_v46 = vmul.f32 %v599_v25, %v577_v34  ;;  %v610_v47 = vmul.f32 %v609_v26, %v577_v34  ;;  %v620_v48 = vmul.f32 %v619_v28, %v577_v34  ;;  %v694_v54 = vmul.f32 %v693_v37, %v577_v34 }
 0x11a   :  { %v689_v50 = vmul.f32 %v688_v15, %v565_v40  ;;  %v699_v51 = vmul.f32 %v698_v17, %v565_v40  ;;  %v571_v52 = vadd.f32 %v824_v36, %v515_v45  ;;  %v557_v53 = vpop.f32.mrf.mxu1  ;;  %v595_v56 = vmul.f32 %v594_v20, %v565_v40 }
 0x11b   :  { %v517_v55 = vpop.f32.mrf.mxu0  ;;  %v605_v57 = vmul.f32 %v604_v22, %v565_v40  ;;  %v615_v58 = vmul.f32 %v614_v24, %v565_v40  ;;  %v704_v59 = vmul.f32 %v703_v39, %v577_v34  ;;  %v709_v3 = vmul.f32 %v708_v43, %v565_v40 }
 0x11c   :  { %v691_v60 = vmul.f32 %v690_v18, %v571_v52  ;;  %v701_v61 = vmul.f32 %v700_v19, %v571_v52  ;;  %v558_v62 = vpop.f32.mrf.mxu1  ;;  %v617_v63 = vmul.f32 %v616_v27, %v571_v52  ;;  %v597_v0 = vmul.f32 %v596_v21, %v571_v52 }
 0x11d   :  { %v518_v1 = vpop.f32.mrf.mxu0  ;;  %v607_v2 = vmul.f32 %v606_v23, %v571_v52  ;;  %v711_v4 = vmul.f32 %v710_v44, %v571_v52  ;;  %v714_v5 = vmul.f32 %v713_v49, %v577_v34  ;;  %v647_v18 = vstv %s635_s9 }
 0x11e   :  { %v618_v6 = vadd.f32 %v617_v63, %v615_v58  ;;  %v692_v7 = vadd.f32 %v691_v60, %v689_v50  ;;  %v702_v8 = vadd.f32 %v701_v61, %v699_v51  ;;  %v598_v9 = vadd.f32 %v597_v0, %v595_v56 }
 0x11f   :  { %v608_v11 = vadd.f32 %v607_v2, %v605_v57  ;;  %v712_v12 = vadd.f32 %v711_v4, %v709_v3  ;;  %v741_v21 = vstv %s729_s10  ;;  %v643_v26 = vstv %s633_s18 }
 0x120   :  { %v621_v14 = vadd.f32 %v620_v48, %v618_v6  ;;  %v695_v15 = vadd.f32 %v694_v54, %v692_v7  ;;  %v705_v16 = vadd.f32 %v704_v59, %v702_v8  ;;  %v601_v17 = vadd.f32 %v600_v46, %v598_v9 }
 0x121   :  { %v611_v19 = vadd.f32 %v610_v47, %v608_v11  ;;  %v715_v20 = vadd.f32 %v714_v5, %v712_v12  ;;  %v731_v27 = vstv %s722_s15  ;;  %v733_v39 = vstv %s1287_s12 }
 0x122   :  { %v623_v22 = vadd.f32 %v622_v32, %v621_v14  ;;  %v697_v23 = vadd.f32 %v696_v38, %v695_v15  ;;  %v707_v24 = vadd.f32 %v706_v42, %v705_v16  ;;  %v603_v25 = vadd.f32 %v602_v30, %v601_v17 }
 0x123   :  { %v613_v28 = vadd.f32 %v612_v31, %v611_v19  ;;  %v717_v29 = vadd.f32 %v716_v13, %v715_v20  ;;  %v737_v32 = vstv %s727_s25  ;;  %v739_v44 = vstv %s1288_s0 }
 0x124   :  { %v648_v34 = vmul.f32 %v647_v18, %v623_v22  ;;  %v730_v35 = vadd.f32 1.0, %v697_v23  ;;  %v735_v36 = vsub.f32 120.0, %v707_v24  ;;  %v636_v37 = vadd.f32 1.0, %v603_v25 }
 0x125   :  { %v641_v38 = vsub.f32 120.0, %v613_v28  ;;  %v742_v40 = vmul.f32 %v741_v21, %v717_v29  ;;  %v645_v45 = vstv %s1289_s13 }
 0x126   :  { %v650_v30 = vsel %vm649_vm3, %v648_v34, inf  ;;  %v732_v41 = vmul.f32 %v731_v27, %v730_v35  ;;  %v736_v42 = vadd.f32 1.0, %v735_v36  ;;  %v638_v43 = vmul.f32 %v637_v10, %v636_v37 }
 0x127   :  { %651 = vmin.xlane.f32.xlu0 %v650_v30  ;;  %v642_v31 = vadd.f32 1.0, %v641_v38  ;;  %v744_v52 = vsel %vm743_vm4, %v742_v40, inf }
 0x128   :  { %v734_v46 = vadd.f32 %v733_v39, %v732_v41  ;;  %v738_v47 = vmul.f32 %v737_v32, %v736_v42  ;;  %v640_v48 = vadd.f32 %v639_v33, %v638_v43 }
 0x129   :  { %v644_v49 = vmul.f32 %v643_v26, %v642_v31 }
 0x12a   :  { %v740_v50 = vadd.f32 %v739_v44, %v738_v47  ;;  %v757_v51 = vrot.slane %v734_v46, 1 }
 0x12b   :  { %v646_v53 = vadd.f32 %v645_v45, %v644_v49  ;;  %745 = vmin.xlane.f32.xlu0 %v744_v52 }
 0x12c   :  { %v762_v54 = vsel %vm649_vm3, %v757_v51, %v740_v50 }
 0x12d   :  { %v663_v55 = vrot.slane %v646_v53, 7 }
 0x12f   :  { %v668_v56 = vsel %vm649_vm3, %v640_v48, %v663_v55 }
 0x1b0   :  { %v652_v57 = vpop.xlane.xlu0 %651 }
 0x1b1   :  { %v653_v58 = vrot.slane %v652_v57, 4 }
 0x1b3   :  { %v654_v59 = vmin.f32 %v652_v57, %v653_v58 }
 0x1b4   :  { %v746_v60 = vpop.xlane.xlu0 %745 }
 0x1b5   :  { %v655_v61 = vrot.slane %v654_v59, 2  ;;  %v747_v62 = vrot.slane %v746_v60, 4 }
 0x1b7   :  { %v748_v63 = vmin.f32 %v746_v60, %v747_v62  ;;  %v656_v0 = vmin.f32 %v654_v59, %v655_v61 }
 0x1b9   :  { %v749_v33 = vrot.slane %v748_v63, 2  ;;  %v657_v1 = vrot.slane %v656_v0, 1 }
 0x1bb   :  { %v750_v2 = vmin.f32 %v748_v63, %v749_v33  ;;  %v658_v3 = vmin.f32 %v656_v0, %v657_v1 }
 0x1bd   :  { %878 = vpush %v658_v3  ;;  %v751_v4 = vrot.slane %v750_v2, 1 }
 0x1bf   :  { %v752_v5 = vmin.f32 %v750_v2, %v751_v4 }
 0x1c1   :  { %880 = vpush %v752_v5 }
 0x1ee   :  { %s879_s17 = spop %878 }
 0x1ef   :  { %v660_v6 = vstv %s879_s17 }
 0x1f0   :  { %v661_v7 = vsub.f32 %v660_v6, %v648_v34 }
 0x1f2   :  { %v666_v8 = vrot.slane %v661_v7, 6  ;;  %s881_s3 = spop %880 }
 0x1f3   :  { %v754_v9 = vstv %s881_s3 }
 0x1f4   :  { %v670_v10 = vsel %vm669_vm5, %v668_v56, %v666_v8  ;;  %v755_v11 = vsub.f32 %v754_v9, %v742_v40 }
 0x1f5   :  { %671 = vst [vmem:[%s1290_s1] sm:$0x7] %v670_v10 }
 0x1f6   :  { %v760_v12 = vrot.slane %v755_v11, 7 }
 0x1f8   :  { %v763_v13 = vsel %vm669_vm5, %v762_v54, %v760_v12 }
 0x1f9   :  { %857 = vst [vmem:[%s1290_s1 + $0x4] sm:$0x7] %v763_v13 }
 0x1fa   :  { %774 = vsyncpa [#allocation3], 1 }
 0x1fb   :  { %775 = vsyncpa [#allocation4], 1 }

</bundles_post_ra>
